<compile_context>
chip_gen: v7x
topology: tpu7x:2x2x1
jax: 0.10.0
libtpu: 0.0.40
codegen_flags: <defaults>
</compile_context>

<pallas_src>
import jax
import jax.numpy as jnp
import numpy as np
from jax.experimental import pallas as pl
from jax.experimental.pallas import tpu as pltpu

NUM_LAYERS = 3
LANE = 128   # TPU lane width: channel dims padded to this for lane-dense slabs


# ----------------------------- Pallas kernel ------------------------------- #
def _make_fused_sage_kernel(num_layers):
    """Fused forward over `num_layers` SAGEConv layers.

    Ref layout (positional): x0, then per layer (oh_tgt, oh_src, w_cat, bias),
    then the output ref.
      oh_tgt : [Nt, E]        one-hot target mask (oh_tgt[t, e] = 1 iff tgt[e] == t)
      oh_src : [E,  Ns]       one-hot source mask (oh_src[e, s] = 1 iff src[e] == s)
      w_cat  : [2*LANE, LANE] = [[W_l padded], [W_r padded]]
      bias   : [1, LANE]
    """
    def kernel(*refs):
        x_ref, o_ref = refs[0], refs[-1]
        x = x_ref[...]                                       # [Ns0, LANE] f32
        for i in range(num_layers):
            oht_ref, ohs_ref, w_ref, b_ref = refs[1 + 4 * i: 1 + 4 * (i + 1)]
            oht = oht_ref[...]                               # [Nt, E]
            ohs = ohs_ref[...]                               # [E, Ns]
            n_tgt = oht.shape[0]
            # Mean aggregation without materializing a dense A:
            #   gather source rows (MXU), segment-sum onto targets (MXU), then /deg.
            gathered = jnp.dot(ohs, x, preferred_element_type=jnp.float32)       # [E, C]
            nbr_sum = jnp.dot(oht, gathered, preferred_element_type=jnp.float32)  # [Nt, C]
            deg = jnp.sum(oht, axis=-1, keepdims=True)                             # [Nt, 1]
            aggr = nbr_sum / jnp.maximum(deg, 1.0)           # zero-degree targets -> 0
            x_tgt = x[:n_tgt]                                # PyG sampler convention
            # Merged lin_l/lin_r: single MXU pass with K = 2*LANE.
            h = jnp.concatenate([aggr, x_tgt], axis=-1)                            # [Nt, 2*LANE]
            out = jnp.dot(h, w_ref[...], preferred_element_type=jnp.float32) + b_ref[...]
            if i != num_layers - 1:
                out = jnp.maximum(out, 0.0)                  # ReLU between layers
            x = out
        o_ref[...] = x.astype(o_ref.dtype)                   # [Nt_last, LANE], lane-dense
    return kernel


# ------------------------------- Glue (JAX) -------------------------------- #
def _pad2d(a, rows, cols):
    return jnp.pad(a, ((0, rows - a.shape[0]), (0, cols - a.shape[1])))


def graphsage_forward(x, adjs, params, num_layers=NUM_LAYERS):
    """Fused Pallas GraphSAGE forward (SAGEConv stack, neighbor-sampler adjs)."""
    n_layers = min(num_layers, len(adjs))
    kernel_args = []
    n_tgt_last = None
    for i in range(n_layers):
        edge_index, _e_id, (n_src, n_tgt) = adjs[i]
        src, tgt = edge_index[0], edge_index[1]
        # One-hot edge masks via vectorized compares against iota (no XLA scatter).
        oh_tgt = (jnp.arange(n_tgt, dtype=tgt.dtype)[:, None]
                  == tgt[None, :]).astype(jnp.float32)                             # [Nt, E]
        oh_src = (src[:, None]
                  == jnp.arange(n_src, dtype=src.dtype)[None, :]).astype(jnp.float32)  # [E, Ns]
        w_l, w_r, b = params[i]
        w_cat = jnp.concatenate(
            [_pad2d(w_l, LANE, LANE), _pad2d(w_r, LANE, LANE)], axis=0)             # [2*LANE, LANE]
        b_pad = _pad2d(b.reshape(1, -1), 1, LANE)                                   # [1, LANE]
        kernel_args += [oh_tgt, oh_src, w_cat, b_pad]
        n_tgt_last = n_tgt

    x_pad = _pad2d(x, x.shape[0], LANE)                      # pad channels to 128 lanes
    c_out = params[n_layers - 1][0].shape[1]

    vmem = pl.BlockSpec(memory_space=pltpu.MemorySpace.VMEM)
    out_pad = pl.pallas_call(
        _make_fused_sage_kernel(n_layers),
        out_shape=jax.ShapeDtypeStruct((n_tgt_last, LANE), jnp.float32),
        in_specs=[vmem] * (1 + 4 * n_layers),
        out_specs=vmem,
    )(x_pad, *kernel_args)
    return out_pad[:, :c_out]


def init_sage_params(key, layer_dims):
    """Deterministic SAGEConv params: (w_l [Cin,Cout], w_r [Cin,Cout], b [Cout])."""
    params = []
    for (c_in, c_out) in layer_dims:
        key, k1, k2, k3 = jax.random.split(key, 4)
        bound = 1.0 / np.sqrt(c_in)
        w_l = jax.random.uniform(k1, (c_in, c_out), jnp.float32, -bound, bound)
        w_r = jax.random.uniform(k2, (c_in, c_out), jnp.float32, -bound, bound)
        b = jax.random.uniform(k3, (c_out,), jnp.float32, -bound, bound)
        params.append((w_l, w_r, b))
    return params


# ------------------------ Pure-JAX reference (check) ------------------------ #
def build_mean_adj(edge_index, n_src, n_tgt):
    """Dense mean-aggregation matrix (reference only): A[t,s] = mult(s->t)/deg(t)."""
    src, tgt = edge_index[0], edge_index[1]
    counts = jnp.zeros((n_tgt, n_src), jnp.float32).at[tgt, src].add(1.0)
    deg = counts.sum(axis=1, keepdims=True)
    return counts / jnp.maximum(deg, 1.0)


def graphsage_forward_ref(x, adjs, params, num_layers=NUM_LAYERS):
    for i, (edge_index, _e_id, size) in enumerate(adjs):
        if i >= num_layers:
            break
        n_src, n_tgt = size
        x_target = x[:n_tgt]
        a = build_mean_adj(edge_index, n_src, n_tgt)
        w_l, w_r, b = params[i]
        out = (a @ x) @ w_l + x_target @ w_r + b
        x = jnp.maximum(out, 0.0) if i != num_layers - 1 else out
    return x


# --------------------------------- Main ------------------------------------ #
if __name__ == "__main__":
    key = jax.random.PRNGKey(0)

    in_channels, hidden_channels, out_channels = 16, 32, 8
    # Neighbor-sampler style sizes per hop: (num_source_nodes, num_target_nodes)
    node_counts = [64, 32, 16, 8]
    num_edges = 128

    # Input node features for the outermost hop.
    key, kx = jax.random.split(key)
    x = jax.random.normal(kx, (node_counts[0], in_channels), jnp.float32)

    # Build deterministic (edge_index, e_id, size) triples for each hop.
    adjs = []
    for hop in range(NUM_LAYERS):
        n_src, n_tgt = node_counts[hop], node_counts[hop + 1]
        key, ks, kt = jax.random.split(key, 3)
        src = jax.random.randint(ks, (num_edges,), 0, n_src, jnp.int32)
        tgt = jax.random.randint(kt, (num_edges,), 0, n_tgt, jnp.int32)
        edge_index = jnp.stack([src, tgt], axis=0)          # [2, E]
        e_id = jnp.arange(num_edges, dtype=jnp.int32)       # unused, parity w/ PyG
        adjs.append((edge_index, e_id, (n_src, n_tgt)))

    layer_dims = [(in_channels, hidden_channels),
                  (hidden_channels, hidden_channels),
                  (hidden_channels, out_channels)]
    key, kp = jax.random.split(key)
    params = init_sage_params(kp, layer_dims)

    out = graphsage_forward(x, adjs, params)
    out = jax.block_until_ready(out)

    ref = graphsage_forward_ref(x, adjs, params)
    assert out.shape == (node_counts[-1], out_channels)
    # f32 everywhere; small tolerance relaxation only for MXU summation-order
    # differences (merged K=2*128 dot + two-matmul aggregation vs reference).
    np.testing.assert_allclose(np.asarray(out), np.asarray(ref),
                               rtol=1e-4, atol=1e-4)

    print("KERNEL_OK")
</pallas_src>

<mosaic_0001>
module attributes {stable_mosaic.version = 11 : i64} {
  func.func @kernel(%arg0: memref<64x128xf32, #tpu.memory_space<vmem>>, %arg1: memref<32x128xf32, #tpu.memory_space<vmem>>, %arg2: memref<128x64xf32, #tpu.memory_space<vmem>>, %arg3: memref<256x128xf32, #tpu.memory_space<vmem>>, %arg4: memref<1x128xf32, #tpu.memory_space<vmem>>, %arg5: memref<16x128xf32, #tpu.memory_space<vmem>>, %arg6: memref<128x32xf32, #tpu.memory_space<vmem>>, %arg7: memref<256x128xf32, #tpu.memory_space<vmem>>, %arg8: memref<1x128xf32, #tpu.memory_space<vmem>>, %arg9: memref<8x128xf32, #tpu.memory_space<vmem>>, %arg10: memref<128x16xf32, #tpu.memory_space<vmem>>, %arg11: memref<256x128xf32, #tpu.memory_space<vmem>>, %arg12: memref<1x128xf32, #tpu.memory_space<vmem>>, %arg13: memref<8x128xf32, #tpu.memory_space<vmem>>) attributes {dimension_semantics = [], scalar_prefetch = 0 : i64, scratch_operands = 0 : i64, tpu.core_type = #tpu.core_type<tc>} {
    %c0 = arith.constant 0 : index
    %c0_0 = arith.constant 0 : index
    %0 = vector.load %arg0[%c0, %c0_0] : memref<64x128xf32, #tpu.memory_space<vmem>>, vector<64x128xf32>
    %c0_1 = arith.constant 0 : index
    %c0_2 = arith.constant 0 : index
    %1 = vector.load %arg1[%c0_1, %c0_2] : memref<32x128xf32, #tpu.memory_space<vmem>>, vector<32x128xf32>
    %c0_3 = arith.constant 0 : index
    %c0_4 = arith.constant 0 : index
    %2 = vector.load %arg2[%c0_3, %c0_4] : memref<128x64xf32, #tpu.memory_space<vmem>>, vector<128x64xf32>
    %cst = arith.constant dense<0.000000e+00> : vector<128x128xf32>
    %3 = tpu.matmul %2, %0, %cst {dimension_numbers = #tpu.dot_dimension_numbers<[1], [0], [0], [1], [0, 0, 1, 1], [], []>} : vector<128x64xf32>, vector<64x128xf32>, vector<128x128xf32> -> vector<128x128xf32>
    %cst_5 = arith.constant dense<0.000000e+00> : vector<32x128xf32>
    %4 = tpu.matmul %1, %3, %cst_5 {dimension_numbers = #tpu.dot_dimension_numbers<[1], [0], [0], [1], [0, 0, 1, 1], [], []>} : vector<32x128xf32>, vector<128x128xf32>, vector<32x128xf32> -> vector<32x128xf32>
    %cst_6 = arith.constant dense<0.000000e+00> : vector<32xf32>
    %5 = vector.multi_reduction <add>, %1, %cst_6 [1] : vector<32x128xf32> to vector<32xf32>
    %6 = vector.shape_cast %5 : vector<32xf32> to vector<32x1xf32>
    %cst_7 = arith.constant 1.000000e+00 : f32
    %7 = vector.broadcast %cst_7 : f32 to vector<32x1xf32>
    %8 = arith.maximumf %6, %7 : vector<32x1xf32>
    %9 = vector.broadcast %8 : vector<32x1xf32> to vector<32x128xf32>
    %10 = arith.divf %4, %9 : vector<32x128xf32>
    %11 = vector.extract_strided_slice %0 {offsets = [0, 0], sizes = [32, 128], strides = [1, 1]} : vector<64x128xf32> to vector<32x128xf32>
    %12 = tpu.concatenate %10, %11 in 1 : vector<32x128xf32>, vector<32x128xf32> -> vector<32x256xf32>
    %c0_8 = arith.constant 0 : index
    %c0_9 = arith.constant 0 : index
    %13 = vector.load %arg3[%c0_8, %c0_9] : memref<256x128xf32, #tpu.memory_space<vmem>>, vector<256x128xf32>
    %cst_10 = arith.constant dense<0.000000e+00> : vector<32x128xf32>
    %14 = tpu.matmul %12, %13, %cst_10 {dimension_numbers = #tpu.dot_dimension_numbers<[1], [0], [0], [1], [0, 0, 1, 1], [], []>} : vector<32x256xf32>, vector<256x128xf32>, vector<32x128xf32> -> vector<32x128xf32>
    %c0_11 = arith.constant 0 : index
    %c0_12 = arith.constant 0 : index
    %15 = vector.load %arg4[%c0_11, %c0_12] : memref<1x128xf32, #tpu.memory_space<vmem>>, vector<1x128xf32>
    %16 = vector.broadcast %15 : vector<1x128xf32> to vector<32x128xf32>
    %17 = arith.addf %14, %16 : vector<32x128xf32>
    %cst_13 = arith.constant 0.000000e+00 : f32
    %18 = vector.broadcast %cst_13 : f32 to vector<32x128xf32>
    %19 = arith.maximumf %17, %18 : vector<32x128xf32>
    %c0_14 = arith.constant 0 : index
    %c0_15 = arith.constant 0 : index
    %20 = vector.load %arg5[%c0_14, %c0_15] : memref<16x128xf32, #tpu.memory_space<vmem>>, vector<16x128xf32>
    %c0_16 = arith.constant 0 : index
    %c0_17 = arith.constant 0 : index
    %21 = vector.load %arg6[%c0_16, %c0_17] : memref<128x32xf32, #tpu.memory_space<vmem>>, vector<128x32xf32>
    %cst_18 = arith.constant dense<0.000000e+00> : vector<128x128xf32>
    %22 = tpu.matmul %21, %19, %cst_18 {dimension_numbers = #tpu.dot_dimension_numbers<[1], [0], [0], [1], [0, 0, 1, 1], [], []>} : vector<128x32xf32>, vector<32x128xf32>, vector<128x128xf32> -> vector<128x128xf32>
    %cst_19 = arith.constant dense<0.000000e+00> : vector<16x128xf32>
    %23 = tpu.matmul %20, %22, %cst_19 {dimension_numbers = #tpu.dot_dimension_numbers<[1], [0], [0], [1], [0, 0, 1, 1], [], []>} : vector<16x128xf32>, vector<128x128xf32>, vector<16x128xf32> -> vector<16x128xf32>
    %cst_20 = arith.constant dense<0.000000e+00> : vector<16xf32>
    %24 = vector.multi_reduction <add>, %20, %cst_20 [1] : vector<16x128xf32> to vector<16xf32>
    %25 = vector.shape_cast %24 : vector<16xf32> to vector<16x1xf32>
    %cst_21 = arith.constant 1.000000e+00 : f32
    %26 = vector.broadcast %cst_21 : f32 to vector<16x1xf32>
    %27 = arith.maximumf %25, %26 : vector<16x1xf32>
    %28 = vector.broadcast %27 : vector<16x1xf32> to vector<16x128xf32>
    %29 = arith.divf %23, %28 : vector<16x128xf32>
    %30 = vector.extract_strided_slice %19 {offsets = [0, 0], sizes = [16, 128], strides = [1, 1]} : vector<32x128xf32> to vector<16x128xf32>
    %31 = tpu.concatenate %29, %30 in 1 : vector<16x128xf32>, vector<16x128xf32> -> vector<16x256xf32>
    %c0_22 = arith.constant 0 : index
    %c0_23 = arith.constant 0 : index
    %32 = vector.load %arg7[%c0_22, %c0_23] : memref<256x128xf32, #tpu.memory_space<vmem>>, vector<256x128xf32>
    %cst_24 = arith.constant dense<0.000000e+00> : vector<16x128xf32>
    %33 = tpu.matmul %31, %32, %cst_24 {dimension_numbers = #tpu.dot_dimension_numbers<[1], [0], [0], [1], [0, 0, 1, 1], [], []>} : vector<16x256xf32>, vector<256x128xf32>, vector<16x128xf32> -> vector<16x128xf32>
    %c0_25 = arith.constant 0 : index
    %c0_26 = arith.constant 0 : index
    %34 = vector.load %arg8[%c0_25, %c0_26] : memref<1x128xf32, #tpu.memory_space<vmem>>, vector<1x128xf32>
    %35 = vector.broadcast %34 : vector<1x128xf32> to vector<16x128xf32>
    %36 = arith.addf %33, %35 : vector<16x128xf32>
    %cst_27 = arith.constant 0.000000e+00 : f32
    %37 = vector.broadcast %cst_27 : f32 to vector<16x128xf32>
    %38 = arith.maximumf %36, %37 : vector<16x128xf32>
    %c0_28 = arith.constant 0 : index
    %c0_29 = arith.constant 0 : index
    %39 = vector.load %arg9[%c0_28, %c0_29] : memref<8x128xf32, #tpu.memory_space<vmem>>, vector<8x128xf32>
    %c0_30 = arith.constant 0 : index
    %c0_31 = arith.constant 0 : index
    %40 = vector.load %arg10[%c0_30, %c0_31] : memref<128x16xf32, #tpu.memory_space<vmem>>, vector<128x16xf32>
    %cst_32 = arith.constant dense<0.000000e+00> : vector<128x128xf32>
    %41 = tpu.matmul %40, %38, %cst_32 {dimension_numbers = #tpu.dot_dimension_numbers<[1], [0], [0], [1], [0, 0, 1, 1], [], []>} : vector<128x16xf32>, vector<16x128xf32>, vector<128x128xf32> -> vector<128x128xf32>
    %cst_33 = arith.constant dense<0.000000e+00> : vector<8x128xf32>
    %42 = tpu.matmul %39, %41, %cst_33 {dimension_numbers = #tpu.dot_dimension_numbers<[1], [0], [0], [1], [0, 0, 1, 1], [], []>} : vector<8x128xf32>, vector<128x128xf32>, vector<8x128xf32> -> vector<8x128xf32>
    %cst_34 = arith.constant dense<0.000000e+00> : vector<8xf32>
    %43 = vector.multi_reduction <add>, %39, %cst_34 [1] : vector<8x128xf32> to vector<8xf32>
    %44 = vector.shape_cast %43 : vector<8xf32> to vector<8x1xf32>
    %cst_35 = arith.constant 1.000000e+00 : f32
    %45 = vector.broadcast %cst_35 : f32 to vector<8x1xf32>
    %46 = arith.maximumf %44, %45 : vector<8x1xf32>
    %47 = vector.broadcast %46 : vector<8x1xf32> to vector<8x128xf32>
    %48 = arith.divf %42, %47 : vector<8x128xf32>
    %49 = vector.extract_strided_slice %38 {offsets = [0, 0], sizes = [8, 128], strides = [1, 1]} : vector<16x128xf32> to vector<8x128xf32>
    %50 = tpu.concatenate %48, %49 in 1 : vector<8x128xf32>, vector<8x128xf32> -> vector<8x256xf32>
    %c0_36 = arith.constant 0 : index
    %c0_37 = arith.constant 0 : index
    %51 = vector.load %arg11[%c0_36, %c0_37] : memref<256x128xf32, #tpu.memory_space<vmem>>, vector<256x128xf32>
    %cst_38 = arith.constant dense<0.000000e+00> : vector<8x128xf32>
    %52 = tpu.matmul %50, %51, %cst_38 {dimension_numbers = #tpu.dot_dimension_numbers<[1], [0], [0], [1], [0, 0, 1, 1], [], []>} : vector<8x256xf32>, vector<256x128xf32>, vector<8x128xf32> -> vector<8x128xf32>
    %c0_39 = arith.constant 0 : index
    %c0_40 = arith.constant 0 : index
    %53 = vector.load %arg12[%c0_39, %c0_40] : memref<1x128xf32, #tpu.memory_space<vmem>>, vector<1x128xf32>
    %54 = vector.broadcast %53 : vector<1x128xf32> to vector<8x128xf32>
    %55 = arith.addf %52, %54 : vector<8x128xf32>
    %c0_41 = arith.constant 0 : index
    %c0_42 = arith.constant 0 : index
    %56 = vector.load %arg13[%c0_41, %c0_42] : memref<8x128xf32, #tpu.memory_space<vmem>>, vector<8x128xf32>
    tpu.vector_store %arg13[%c0_41, %c0_42], %55 {strides = array<i32>} : memref<8x128xf32, #tpu.memory_space<vmem>>, vector<8x128xf32>,
    return
  }
}

</mosaic_0001>

<bundles_post_ra>
// kernel: tpu_custom_call.1
= control target key start
LH: loop header
LB: loop body
LE: loop exit
PB: predicated region body
PF: predicated region fallthrough
CT: control target
= control target key end

     0   :  { %18 = vsyncpa [#allocation3], 0  ;;  %s2874_s0 = inlined_call_operand.hbm [shape: f32[64,128], index: 0, kind: input, shape index: {}]   ;;  %s2875_s1 = inlined_call_operand.hbm [shape: f32[32,128], index: 1, kind: input, shape index: {}]   ;;  %s2876_s2 = inlined_call_operand.vmem [shape: f32[128,64], index: 2, kind: input, shape index: {}]   ;;  %s2877_s3 = inlined_call_operand.vmem [shape: f32[256,128], index: 3, kind: input, shape index: {}]   ;;  %s2878_s4 = inlined_call_operand.vmem [shape: f32[1,128], index: 4, kind: input, shape index: {}]   ;;  %s2879_s5 = inlined_call_operand.hbm [shape: f32[16,128], index: 5, kind: input, shape index: {}]   ;;  %s2880_s6 = inlined_call_operand.vmem [shape: f32[128,32], index: 6, kind: input, shape index: {}]   ;;  %s2881_s7 = inlined_call_operand.vmem [shape: f32[256,128], index: 7, kind: input, shape index: {}]   ;;  %s2882_s8 = inlined_call_operand.vmem [shape: f32[1,128], index: 8, kind: input, shape index: {}]   ;;  %s2883_s9 = inlined_call_operand.hbm [shape: f32[8,128], index: 9, kind: input, shape index: {}]   ;;  %s2884_s10 = inlined_call_operand.vmem [shape: f32[128,16], index: 10, kind: input, shape index: {}]   ;;  %s2885_s11 = inlined_call_operand.hbm [shape: f32[256,128], index: 11, kind: input, shape index: {}]   ;;  %s2886_s12 = inlined_call_operand.vmem [shape: f32[1,128], index: 12, kind: input, shape index: {}]   ;;  %s2887_s13 = inlined_call_operand.hbm [shape: f32[8,128], index: 13, kind: output, shape index: {}]  }
   0x1   :  { %19 = vsyncpa [#allocation6], 0 }
   0x2   :  { %20 = vsyncpa [#allocation9], 0 }
   0x3   :  { %21 = vsyncpa [#allocation4], 0  ;;  %s2262_s25 = smov [#allocation5]   ;;  %s2263_s27 = smov [#allocation8]  }
   0x4   :  { %s39_s26 = sshll.u32 %s2262_s25, 4  ;;  %s76_s28 = sshll.u32 %s2263_s27, 4  ;;  %s40_s26 = int_to_ptr.vmem [resolvable:$true] %s39_s26  ;;  %s77_s28 = int_to_ptr.vmem [resolvable:$true] %s76_s28 }
   0x5   :  { %s2122_s14 = scalar_lea.hbm %s2875_s1, 512 }
   0x6   :  { %p2123_p0 = scmp.ne.s32.totalorder %s2875_s1, %s2122_s14  ;;  %p2126_p1 = scmp.lt.u32.totalorder %s2122_s14, %s2875_s1 }
   0x8   :  { %p2128_p2 = pnand %p2126_p1, %p2123_p0 }
   0xa   :  { %2131 = shalt.err (!%p2128_p2)
}
   0xb   :  { %s2132_s19 = scalar_lea.vmem %s40_s26, 512  ;;  %p2137_p4 = scmp.lt.s32.totalorder %s40_s26, %s40_s26 }
   0xc   :  { %p2133_p3 = scmp.ne.s32.totalorder %s40_s26, %s2132_s19  ;;  %p2138_p5 = scmp.lt.s32.totalorder %s2132_s19, %s2132_s19 }
   0xe   :  { %p2139_p6 = por %p2138_p5, %p2137_p4 }
  0x10   :  { %p2140_p7 = pnand %p2139_p6, %p2133_p3 }
  0x12   :  { %2143 = shalt.err (!%p2140_p7)
}
  0x13   :  { %s2264_s20 = smov 128   ;;  %s2265_s21 = smov 8  }
  0x14   :  { %45 = dma.hbm_to_vmem [thread:$0]  %s2875_s1, 512, %s40_s26, [#allocation6], %s2264_s20, %s2264_s20, %s2265_s21  }
  0x15   :  { %s2144_s27 = scalar_lea.hbm %s2883_s9, 128 }
  0x16   :  { %p2145_p8 = scmp.ne.s32.totalorder %s2883_s9, %s2144_s27  ;;  %p2148_p9 = scmp.lt.u32.totalorder %s2144_s27, %s2883_s9 }
  0x18   :  { %p2150_p10 = pnand %p2148_p9, %p2145_p8 }
  0x1a   :  { %2153 = shalt.err (!%p2150_p10)
}
  0x1b   :  { %s2154_s16 = scalar_lea.vmem %s77_s28, 128  ;;  %p2159_p12 = scmp.lt.s32.totalorder %s77_s28, %s77_s28 }
  0x1c   :  { %p2155_p11 = scmp.ne.s32.totalorder %s77_s28, %s2154_s16  ;;  %p2160_p13 = scmp.lt.s32.totalorder %s2154_s16, %s2154_s16 }
  0x1e   :  { %p2161_p0 = por %p2160_p13, %p2159_p12 }
  0x20   :  { %p2162_p1 = pnand %p2161_p0, %p2155_p11 }
  0x22   :  { %2165 = shalt.err (!%p2162_p1)
}
  0x23   :  { %79 = dma.hbm_to_vmem [thread:$0]  %s2883_s9, 128, %s77_s28, [#allocation9]  }
  0x24   :  { %s2266_s17 = smov [#allocation2]   ;;  %s2267_s19 = smov [#allocation7]  }
  0x25   :  { %s27_s18 = sshll.u32 %s2266_s17, 4  ;;  %s57_s22 = sshll.u32 %s2267_s19, 4  ;;  %s28_s18 = int_to_ptr.vmem [resolvable:$true] %s27_s18  ;;  %s2370_s22 = int_to_ptr.vmem [resolvable:$true] %s57_s22 }
  0x26   :  { %s2166_s25 = scalar_lea.hbm %s2874_s0, 1024 }
  0x27   :  { %p2167_p2 = scmp.ne.s32.totalorder %s2874_s0, %s2166_s25  ;;  %p2170_p3 = scmp.lt.u32.totalorder %s2166_s25, %s2874_s0 }
  0x29   :  { %p2172_p4 = pnand %p2170_p3, %p2167_p2 }
  0x2b   :  { %2175 = shalt.err (!%p2172_p4)
}
  0x2c   :  { %s2176_s9 = scalar_lea.vmem %s28_s18, 1024  ;;  %p2181_p6 = scmp.lt.s32.totalorder %s28_s18, %s28_s18 }
  0x2d   :  { %p2177_p5 = scmp.ne.s32.totalorder %s28_s18, %s2176_s9  ;;  %p2182_p7 = scmp.lt.s32.totalorder %s2176_s9, %s2176_s9 }
  0x2f   :  { %p2183_p8 = por %p2182_p7, %p2181_p6 }
  0x31   :  { %p2184_p9 = pnand %p2183_p8, %p2177_p5 }
  0x33   :  { %2187 = shalt.err (!%p2184_p9)
}
  0x34   :  { %33 = dma.hbm_to_vmem [thread:$0]  %s2874_s0, 1024, %s28_s18, [#allocation3], %s2264_s20, %s2264_s20, %s2265_s21  }
  0x35   :  { %s2188_s26 = scalar_lea.hbm %s2879_s5, 256 }
  0x36   :  { %p2189_p10 = scmp.ne.s32.totalorder %s2879_s5, %s2188_s26  ;;  %p2192_p11 = scmp.lt.u32.totalorder %s2188_s26, %s2879_s5 }
  0x38   :  { %p2194_p12 = pnand %p2192_p11, %p2189_p10 }
  0x3a   :  { %2197 = shalt.err (!%p2194_p12)
}
  0x3b   :  { %s2198_s25 = scalar_lea.vmem %s2370_s22, 256  ;;  %p2203_p0 = scmp.lt.s32.totalorder %s2370_s22, %s2370_s22 }
  0x3c   :  { %p2199_p13 = scmp.ne.s32.totalorder %s2370_s22, %s2198_s25  ;;  %p2204_p1 = scmp.lt.s32.totalorder %s2198_s25, %s2198_s25 }
  0x3e   :  { %p2205_p2 = por %p2204_p1, %p2203_p0 }
  0x40   :  { %p2206_p3 = pnand %p2205_p2, %p2199_p13 }
  0x42   :  { %2209 = shalt.err (!%p2206_p3)
}
  0x43   :  { %63 = dma.hbm_to_vmem [thread:$0]  %s2879_s5, 256, %s2370_s22, [#allocation6], %s2264_s20, %s2264_s20, %s2265_s21  }
  0x44   :  { %s2268_s27 = smov [#allocation10]   ;;  %s2210_s9 = scalar_lea.hbm %s2885_s11, 4096 }
  0x45   :  { %s87_s29 = sshll.u32 %s2268_s27, 4  ;;  %p2211_p4 = scmp.ne.s32.totalorder %s2885_s11, %s2210_s9  ;;  %s88_s29 = int_to_ptr.vmem [resolvable:$true] %s87_s29 }
  0x46   :  { %p2214_p5 = scmp.lt.u32.totalorder %s2210_s9, %s2885_s11 }
  0x48   :  { %p2216_p6 = pnand %p2214_p5, %p2211_p4 }
  0x4a   :  { %2219 = shalt.err (!%p2216_p6)
}
  0x4b   :  { %s2220_s26 = scalar_lea.vmem %s88_s29, 4096  ;;  %p2225_p8 = scmp.lt.s32.totalorder %s88_s29, %s88_s29 }
  0x4c   :  { %p2221_p7 = scmp.ne.s32.totalorder %s88_s29, %s2220_s26  ;;  %p2226_p9 = scmp.lt.s32.totalorder %s2220_s26, %s2220_s26 }
  0x4e   :  { %p2227_p10 = por %p2226_p9, %p2225_p8 }
  0x50   :  { %p2228_p11 = pnand %p2227_p10, %p2221_p7 }
  0x52   :  { %2231 = shalt.err (!%p2228_p11)
}
  0x53   :  { %93 = dma.hbm_to_vmem [thread:$0]  %s2885_s11, 4096, %s88_s29, [#allocation9], %s2264_s20, %s2264_s20, %s2265_s21  }
  0x54   :  { %2254 = dma.done.wait [#allocation3], 1024  }
  0x55   :  { %2255 = vsyncadd [#allocation3], 4294966272 }
  0x56   :  { %2256 = dma.done.wait [#allocation6], 768  }
  0x57   :  { %2257 = vsyncadd [#allocation6], 4294966528 }
  0x58   :  { %2258 = dma.done.wait [#allocation9], 4224  }
  0x59   :  { %2259 = vsyncadd [#allocation9], 4294963072  ;;  %v111_v0 = vld [vmem:[#allocation2] sm:$0xff]  ;;  %v2422_v1 = vld [vmem:[#allocation2 + $0x8] sm:$0xff]  ;;  %vm139_vm0 = vcmask 523264   ;;  %vm584_vm1 = vcmask 261120  }
  0x5a   :  { %v2424_v2 = vld [vmem:[#allocation2 + $0x10] sm:$0xff]  ;;  %v1885_v3 = vpack.c.bf16 %v2422_v1, %v111_v0  ;;  %v2427_v4 = vld [vmem:[#allocation2 + $0x18] sm:$0xff]  ;;  %v115_v6 = vld [vmem:[#allocation2 + $0x20] sm:$0xff]  ;;  %vm996_vm2 = vcmask 130048   ;;  %vm2270_vm3 = vmmov 0   ;;  %s2272_s23 = smov [#allocation11]  }
  0x5b   :  { %v1889_v5 = vpack.c.bf16 %v2427_v4, %v2424_v2  ;;  %v116_v7 = vld [vmem:[#allocation2 + $0x28] sm:$0xff]  ;;  %v123_v8 = vld [vmem:[%s2876_s2] sm:$0xff]  ;;  %v117_v10 = vld [vmem:[#allocation2 + $0x30] sm:$0xff] }
  0x5c   :  { %1886 = vmatprep.subr.bf16.mxu0 %v1885_v3  ;;  %1693 = vmatprep.mubr.msk.f32.mxu0 %vm139_vm0, %v123_v8  ;;  %v1893_v9 = vpack.c.bf16 %v116_v7, %v115_v6  ;;  %v118_v11 = vld [vmem:[#allocation2 + $0x38] sm:$0xff]  ;;  %v124_v13 = vld [vmem:[%s2876_s2 + $0x8] sm:$0xff]  ;;  %v125_v14 = vld [vmem:[%s2876_s2 + $0x10] sm:$0xff] }
  0x5d   :  { %1888 = vmatpush3.bf16.msra.mxu0 %v1885_v3  ;;  %v1897_v12 = vpack.c.bf16 %v118_v11, %v117_v10  ;;  %v126_v15 = vld [vmem:[%s2876_s2 + $0x18] sm:$0xff]  ;;  %v127_v16 = vld [vmem:[%s2876_s2 + $0x20] sm:$0xff]  ;;  %v128_v17 = vld [vmem:[%s2876_s2 + $0x28] sm:$0xff] }
  0x5e   :  { %1890 = vmatprep.subr.bf16.mxu0 %v1889_v5  ;;  %v129_v18 = vld [vmem:[%s2876_s2 + $0x30] sm:$0xff]  ;;  %v130_v19 = vld [vmem:[%s2876_s2 + $0x38] sm:$0xff]  ;;  %v131_v20 = vld [vmem:[%s2876_s2 + $0x40] sm:$0xff] }
  0x5f   :  { %v132_v21 = vld [vmem:[%s2876_s2 + $0x48] sm:$0xff]  ;;  %v133_v22 = vld [vmem:[%s2876_s2 + $0x50] sm:$0xff]  ;;  %v134_v23 = vld [vmem:[%s2876_s2 + $0x58] sm:$0xff] }
  0x60   :  { %v135_v24 = vld [vmem:[%s2876_s2 + $0x60] sm:$0xff]  ;;  %v136_v25 = vld [vmem:[%s2876_s2 + $0x68] sm:$0xff]  ;;  %v137_v26 = vld [vmem:[%s2876_s2 + $0x70] sm:$0xff] }
  0x61   :  { %1892 = vmatpush3.bf16.msra.mxu0 %v1889_v5  ;;  %v138_v27 = vld [vmem:[%s2876_s2 + $0x78] sm:$0xff]  ;;  %v119_v28 = vld [vmem:[#allocation5] sm:$0xff]  ;;  %v2495_v29 = vld [vmem:[#allocation5 + $0x10] sm:$0xff] }
  0x62   :  { %1894 = vmatprep.subr.bf16.mxu0 %v1893_v9  ;;  %1749 = vmatprep.mubr.f32.mxu1 %v119_v28  ;;  %v2497_v30 = vld [vmem:[#allocation5 + $0x8] sm:$0xff]  ;;  %v2501_v31 = vld [vmem:[#allocation5 + $0x18] sm:$0xff]  ;;  %v454_v32 = vld [vmem:[%s2877_s3 + $0x80] sm:$0xff] }
  0x63   :  { %418 = vadd.xlane.f32.xlu0 %v119_v28  ;;  %422 = vadd.xlane.f32.xlu1 %v2495_v29  ;;  %v455_v33 = vld [vmem:[%s2877_s3 + $0x88] sm:$0xff]  ;;  %v438_v34 = vld [vmem:[%s2877_s3] sm:$0xff]  ;;  %v456_v37 = vld [vmem:[%s2877_s3 + $0x90] sm:$0xff] }
  0x64   :  { %v1933_v35 = vpack.c.bf16 %v455_v33, %v454_v32  ;;  %v439_v36 = vld [vmem:[%s2877_s3 + $0x8] sm:$0xff]  ;;  %v457_v38 = vld [vmem:[%s2877_s3 + $0x98] sm:$0xff]  ;;  %v440_v41 = vld [vmem:[%s2877_s3 + $0x10] sm:$0xff] }
  0x65   :  { %1896 = vmatpush3.bf16.msra.mxu0 %v1893_v9  ;;  %v1935_v39 = vpack.c.bf16 %v439_v36, %v438_v34  ;;  %v1937_v40 = vpack.c.bf16 %v457_v38, %v456_v37  ;;  %v441_v42 = vld [vmem:[%s2877_s3 + $0x18] sm:$0xff]  ;;  %v458_v43 = vld [vmem:[%s2877_s3 + $0xa0] sm:$0xff]  ;;  %v459_v44 = vld [vmem:[%s2877_s3 + $0xa8] sm:$0xff] }
  0x66   :  { %1898 = vmatprep.subr.bf16.mxu0 %v1897_v12  ;;  %v1939_v45 = vpack.c.bf16 %v441_v42, %v440_v41  ;;  %v1941_v46 = vpack.c.bf16 %v459_v44, %v458_v43  ;;  %v442_v47 = vld [vmem:[%s2877_s3 + $0x20] sm:$0xff]  ;;  %v443_v48 = vld [vmem:[%s2877_s3 + $0x28] sm:$0xff]  ;;  %v460_v50 = vld [vmem:[%s2877_s3 + $0xb0] sm:$0xff] }
  0x67   :  { %420 = vadd.xlane.f32.xlu0 %v2497_v30  ;;  %424 = vadd.xlane.f32.xlu1 %v2501_v31  ;;  %v1943_v49 = vpack.c.bf16 %v443_v48, %v442_v47  ;;  %v461_v51 = vld [vmem:[%s2877_s3 + $0xb8] sm:$0xff]  ;;  %v444_v52 = vld [vmem:[%s2877_s3 + $0x30] sm:$0xff]  ;;  %v462_v56 = vld [vmem:[%s2877_s3 + $0xc0] sm:$0xff] }
  0x68   :  { %v1945_v53 = vpack.c.bf16 %v461_v51, %v460_v50  ;;  %v445_v54 = vld [vmem:[%s2877_s3 + $0x38] sm:$0xff]  ;;  %v463_v57 = vld [vmem:[%s2877_s3 + $0xc8] sm:$0xff]  ;;  %v446_v58 = vld [vmem:[%s2877_s3 + $0x40] sm:$0xff] }
  0x69   :  { %1900 = vmatpush3.bf16.msra.mxu0 %v1897_v12  ;;  %v1947_v55 = vpack.c.bf16 %v445_v54, %v444_v52  ;;  %v1949_v59 = vpack.c.bf16 %v463_v57, %v462_v56  ;;  %v447_v60 = vld [vmem:[%s2877_s3 + $0x48] sm:$0xff]  ;;  %v464_v61 = vld [vmem:[%s2877_s3 + $0xd0] sm:$0xff]  ;;  %v465_v62 = vld [vmem:[%s2877_s3 + $0xd8] sm:$0xff] }
  0x6a   :  { %1934 = vmatprep.subr.bf16.mxu0 %v1933_v35  ;;  %v1951_v63 = vpack.c.bf16 %v447_v60, %v446_v58  ;;  %v448_v3 = vld [vmem:[%s2877_s3 + $0x50] sm:$0xff]  ;;  %v449_v5 = vld [vmem:[%s2877_s3 + $0x58] sm:$0xff]  ;;  %v466_v6 = vld [vmem:[%s2877_s3 + $0xe0] sm:$0xff] }
  0x6b   :  { %v467_v7 = vld [vmem:[%s2877_s3 + $0xe8] sm:$0xff]  ;;  %v1955_v8 = vpack.c.bf16 %v449_v5, %v448_v3  ;;  %v450_v10 = vld [vmem:[%s2877_s3 + $0x60] sm:$0xff]  ;;  %v469_v41 = vld [vmem:[%s2877_s3 + $0xf8] sm:$0xff] }
  0x6c   :  { %1694 = vmatmul.mubr.msk.f32.vlgmr.msra.gmra.mrb[0].mxu0 %vm139_vm0, %v124_v13  ;;  %v1957_v9 = vpack.c.bf16 %v467_v7, %v466_v6  ;;  %v451_v11 = vld [vmem:[%s2877_s3 + $0x68] sm:$0xff]  ;;  %v452_v43 = vld [vmem:[%s2877_s3 + $0x70] sm:$0xff] }
  0x6d   :  { %1696 = vmatprep.mubr.msk.f32.mxu0 %vm139_vm0, %v125_v14  ;;  %1936 = vmatpush3.bf16.msra.mxu0 %v1935_v39  ;;  %v1959_v12 = vpack.c.bf16 %v451_v11, %v450_v10 }
  0x6e   :  { %1938 = vmatprep.subr.bf16.mxu0 %v1937_v40  ;;  %v468_v40 = vld [vmem:[%s2877_s3 + $0xf0] sm:$0xff] }
  0x6f   :  { %v1961_v42 = vpack.c.bf16 %v469_v41, %v468_v40  ;;  %v583_v40 = vld [vmem:[%s2880_s6 + $0x78] sm:$0xff]  ;;  %v566_v41 = vld [vmem:[#allocation7] sm:$0xff] }
  0x70   :  { %1697 = vmatmul.mubr.msk.f32.gmra.mrb[2].mxu0 %vm139_vm0, %v126_v15  ;;  %853 = vadd.xlane.f32.xlu0 %v566_v41 }
  0x71   :  { %1699 = vmatprep.mubr.msk.f32.mxu0 %vm139_vm0, %v127_v16  ;;  %1940 = vmatpush3.bf16.msra.mxu0 %v1939_v45 }
  0x72   :  { %1942 = vmatprep.subr.bf16.mxu0 %v1941_v46 }
  0x74   :  { %1700 = vmatmul.mubr.msk.f32.gmra.mrb[4].mxu0 %vm139_vm0, %v128_v17 }
  0x75   :  { %1702 = vmatprep.mubr.msk.f32.mxu0 %vm139_vm0, %v129_v18  ;;  %1944 = vmatpush3.bf16.msra.mxu0 %v1943_v49 }
  0x76   :  { %1946 = vmatprep.subr.bf16.mxu0 %v1945_v53 }
  0x78   :  { %1703 = vmatmul.mubr.msk.f32.gmra.mrb[6].mxu0 %vm139_vm0, %v130_v19 }
  0x79   :  { %1705 = vmatprep.mubr.msk.f32.mxu0 %vm139_vm0, %v131_v20  ;;  %1948 = vmatpush3.bf16.msra.mxu0 %v1947_v55 }
  0x7a   :  { %1950 = vmatprep.subr.bf16.mxu0 %v1949_v59 }
  0x7c   :  { %1706 = vmatmul.mubr.msk.f32.gmra.mrb[8].mxu0 %vm139_vm0, %v132_v21 }
  0x7d   :  { %1708 = vmatprep.mubr.msk.f32.mxu0 %vm139_vm0, %v133_v22  ;;  %1952 = vmatpush3.bf16.msra.mxu0 %v1951_v63  ;;  %v568_v63 = vld [vmem:[%s2880_s6] sm:$0xff] }
  0x80   :  { %1709 = vmatmul.mubr.msk.f32.gmra.mrb[10].mxu0 %vm139_vm0, %v134_v23 }
  0x81   :  { %1711 = vmatprep.mubr.msk.f32.mxu0 %vm139_vm0, %v135_v24 }
  0x84   :  { %1712 = vmatmul.mubr.msk.f32.gmra.mrb[12].mxu0 %vm139_vm0, %v136_v25 }
  0x85   :  { %1714 = vmatprep.mubr.msk.f32.mxu0 %vm139_vm0, %v137_v26 }
  0x88   :  { %1715 = vmatmul.mubr.msk.f32.gmra.mrb[14].mxu0 %vm139_vm0, %v138_v27 }
  0x89   :  { %541 = vmatprep.mubr.f32.mxu0 %v111_v0  ;;  %v1953_v0 = vpack.c.bf16 %v465_v62, %v464_v61 }
  0x8b   :  { %1954 = vmatprep.subr.bf16.mxu0 %v1953_v0  ;;  %v1408_v0 = vld [vmem:[%s2878_s4] ss:$0 sm:$0xff] }
  0x8c   :  { %1956 = vmatpush3.bf16.msra.mxu0 %v1955_v8 }
  0x8d   :  { %1958 = vmatprep.subr.bf16.mxu0 %v1957_v9 }
  0x90   :  { %1960 = vmatpush3.bf16.msra.mxu0 %v1959_v12 }
  0x91   :  { %1962 = vmatprep.subr.bf16.mxu0 %v1961_v42  ;;  %v2678_v42 = vld [vmem:[#allocation7 + $0x8] sm:$0xff] }
  0x92   :  { %855 = vadd.xlane.f32.xlu1 %v2678_v42 }
  0xf0   :  { %v423_v46 = vpop.xlane.xlu1 %422 }
  0xf1   :  { %v428_v48 = vmax.f32 %v423_v46, 1.0  ;;  %v882_v46 = vld [vmem:[%s2881_s7 + $0x98] sm:$0xff] }
  0xf4   :  { %v425_v49 = vpop.xlane.xlu1 %424 }
  0xf5   :  { %v429_v50 = vmax.f32 %v425_v49, 1.0  ;;  %v865_v49 = vld [vmem:[%s2881_s7 + $0x10] sm:$0xff] }
 0x13f   :  { %v1695_v13 = vpop.f32.mrb[0].mxu0 }
 0x140   :  { %v254_v14 = vpop.f32.mrb[1].mxu0 }
 0x141   :  { %v1901_v15 = vpack.c.bf16 %v1695_v13, %v254_v14 }
 0x143   :  { %v1698_v16 = vpop.f32.mrb[2].mxu0  ;;  %1902 = vmatprep.subr.bf16.mxu1 %v1901_v15 }
 0x144   :  { %v264_v17 = vpop.f32.mrb[3].mxu0  ;;  %1904 = vmatpush3.bf16.msra.mxu1 %v1901_v15 }
 0x145   :  { %v1905_v18 = vpack.c.bf16 %v1698_v16, %v264_v17 }
 0x147   :  { %v1701_v19 = vpop.f32.mrb[4].mxu0  ;;  %1906 = vmatprep.subr.bf16.mxu1 %v1905_v18 }
 0x148   :  { %v274_v20 = vpop.f32.mrb[5].mxu0  ;;  %1908 = vmatpush3.bf16.msra.mxu1 %v1905_v18 }
 0x149   :  { %v1909_v21 = vpack.c.bf16 %v1701_v19, %v274_v20 }
 0x14b   :  { %v1704_v22 = vpop.f32.mrb[6].mxu0  ;;  %1910 = vmatprep.subr.bf16.mxu1 %v1909_v21 }
 0x14c   :  { %v284_v23 = vpop.f32.mrb[7].mxu0  ;;  %1912 = vmatpush3.bf16.msra.mxu1 %v1909_v21 }
 0x14d   :  { %v1913_v24 = vpack.c.bf16 %v1704_v22, %v284_v23  ;;  %v569_v23 = vld [vmem:[%s2880_s6 + $0x8] sm:$0xff] }
 0x14f   :  { %v1707_v25 = vpop.f32.mrb[8].mxu0  ;;  %1914 = vmatprep.subr.bf16.mxu1 %v1913_v24 }
 0x150   :  { %v294_v26 = vpop.f32.mrb[9].mxu0  ;;  %1916 = vmatpush3.bf16.msra.mxu1 %v1913_v24  ;;  %v570_v24 = vld [vmem:[%s2880_s6 + $0x10] sm:$0xff] }
 0x151   :  { %v1917_v27 = vpack.c.bf16 %v1707_v25, %v294_v26  ;;  %v571_v25 = vld [vmem:[%s2880_s6 + $0x18] sm:$0xff]  ;;  %v572_v26 = vld [vmem:[%s2880_s6 + $0x20] sm:$0xff] }
 0x153   :  { %v1710_v28 = vpop.f32.mrb[10].mxu0  ;;  %1918 = vmatprep.subr.bf16.mxu1 %v1917_v27 }
 0x154   :  { %v304_v32 = vpop.f32.mrb[11].mxu0  ;;  %1920 = vmatpush3.bf16.msra.mxu1 %v1917_v27  ;;  %v573_v27 = vld [vmem:[%s2880_s6 + $0x28] sm:$0xff] }
 0x155   :  { %v1921_v33 = vpack.c.bf16 %v1710_v28, %v304_v32  ;;  %v574_v28 = vld [vmem:[%s2880_s6 + $0x30] sm:$0xff]  ;;  %v575_v32 = vld [vmem:[%s2880_s6 + $0x38] sm:$0xff] }
 0x157   :  { %v1713_v34 = vpop.f32.mrb[12].mxu0  ;;  %1922 = vmatprep.subr.bf16.mxu1 %v1921_v33 }
 0x158   :  { %v314_v35 = vpop.f32.mrb[13].mxu0  ;;  %1924 = vmatpush3.bf16.msra.mxu1 %v1921_v33  ;;  %v576_v33 = vld [vmem:[%s2880_s6 + $0x40] sm:$0xff] }
 0x159   :  { %v1925_v36 = vpack.c.bf16 %v1713_v34, %v314_v35  ;;  %v577_v34 = vld [vmem:[%s2880_s6 + $0x48] sm:$0xff]  ;;  %v578_v35 = vld [vmem:[%s2880_s6 + $0x50] sm:$0xff] }
 0x15b   :  { %v1716_v37 = vpop.f32.mrb[14].mxu0  ;;  %1926 = vmatprep.subr.bf16.mxu1 %v1925_v36 }
 0x15c   :  { %v324_v38 = vpop.f32.mrb[15].mxu0  ;;  %1928 = vmatpush3.bf16.msra.mxu1 %v1925_v36  ;;  %v579_v36 = vld [vmem:[%s2880_s6 + $0x58] sm:$0xff] }
 0x15d   :  { %v1929_v39 = vpack.c.bf16 %v1716_v37, %v324_v38  ;;  %v580_v37 = vld [vmem:[%s2880_s6 + $0x60] sm:$0xff]  ;;  %v581_v38 = vld [vmem:[%s2880_s6 + $0x68] sm:$0xff] }
 0x15f   :  { %1930 = vmatprep.subr.bf16.mxu1 %v1929_v39 }
 0x160   :  { %1932 = vmatpush3.bf16.msra.mxu1 %v1929_v39  ;;  %v582_v39 = vld [vmem:[%s2880_s6 + $0x70] sm:$0xff] }
 0x163   :  { %1750 = vmatmul.mubr.f32.vlgmr.msra.gmra.mrb[0].mxu1 %v2497_v30  ;;  %v453_v30 = vld [vmem:[%s2877_s3 + $0x78] sm:$0xff] }
 0x164   :  { %1752 = vmatprep.mubr.f32.mxu1 %v2495_v29  ;;  %v1963_v29 = vpack.c.bf16 %v453_v30, %v452_v43  ;;  %v879_v43 = vld [vmem:[%s2881_s7 + $0x80] sm:$0xff]  ;;  %v880_v30 = vld [vmem:[%s2881_s7 + $0x88] sm:$0xff] }
 0x166   :  { %1964 = vmatpush3.bf16.msra.mxu0 %v1963_v29  ;;  %v863_v29 = vld [vmem:[%s2881_s7] sm:$0xff] }
 0x167   :  { %1753 = vmatmul.mubr.f32.gmra.mrb[2].mxu1 %v2501_v31  ;;  %v419_v31 = vpop.xlane.xlu0 %418 }
 0x168   :  { %v426_v44 = vmax.f32 %v419_v31, 1.0  ;;  %1763 = vmatprep.mubr.msk.f32.mxu1 %vm584_vm1, %v568_v63  ;;  %v2005_v31 = vpack.c.bf16 %v880_v30, %v879_v43 }
 0x16a   :  { %2108 = vrcp.f32 %v426_v44  ;;  %v864_v44 = vld [vmem:[%s2881_s7 + $0x8] sm:$0xff]  ;;  %2006 = vmatprep.subr.bf16.mxu0 %v2005_v31 }
 0x16b   :  { %v421_v45 = vpop.xlane.xlu0 %420 }
 0x16c   :  { %v427_v47 = vmax.f32 %v421_v45, 1.0  ;;  %v881_v45 = vld [vmem:[%s2881_s7 + $0x90] sm:$0xff] }
 0x16e   :  { %2110 = vrcp.f32 %v427_v47  ;;  %v2007_v47 = vpack.c.bf16 %v864_v44, %v863_v29 }
 0x16f   :  { %2112 = vrcp.f32 %v428_v48  ;;  %v2009_v48 = vpack.c.bf16 %v882_v46, %v881_v45  ;;  %v893_v45 = vld [vmem:[%s2881_s7 + $0xf0] sm:$0xff]  ;;  %v894_v46 = vld [vmem:[%s2881_s7 + $0xf8] sm:$0xff] }
 0x170   :  { %2114 = vrcp.f32 %v429_v50  ;;  %v866_v50 = vld [vmem:[%s2881_s7 + $0x18] sm:$0xff] }
 0x174   :  { %v2109_v51 = vpop.eup %2108 }
 0x178   :  { %v2111_v55 = vpop.eup %2110 }
 0x179   :  { %v2113_v57 = vpop.eup %2112 }
 0x17a   :  { %v2115_v61 = vpop.eup %2114 }
 0x236   :  { %v1751_v52 = vpop.f32.mrb[0].mxu1 }
 0x237   :  { %v399_v53 = vpop.f32.mrb[1].mxu1  ;;  %v433_v59 = vmul.f32 %v2111_v55, %v1751_v52  ;;  %v884_v52 = vld [vmem:[%s2881_s7 + $0xa8] sm:$0xff]  ;;  %v867_v55 = vld [vmem:[%s2881_s7 + $0x20] sm:$0xff] }
 0x238   :  { %v431_v54 = vmul.f32 %v2109_v51, %v399_v53  ;;  %v883_v51 = vld [vmem:[%s2881_s7 + $0xa0] sm:$0xff]  ;;  %v2011_v53 = vpack.c.bf16 %v866_v50, %v865_v49  ;;  %v878_v49 = vld [vmem:[%s2881_s7 + $0x78] sm:$0xff] }
 0x23a   :  { %542 = vmatmul.mubr.f32.vlgmr.msra.gmra.mrb[16].mxu0 %v431_v54  ;;  %v1754_v56 = vpop.f32.mrb[2].mxu1  ;;  %v2013_v54 = vpack.c.bf16 %v884_v52, %v883_v51  ;;  %v856_v52 = vpop.xlane.xlu1 %855 }
 0x23b   :  { %546 = vmatprep.mubr.f32.mxu0 %v2422_v1  ;;  %v409_v58 = vpop.f32.mrb[3].mxu1  ;;  %v437_v62 = vmul.f32 %v2115_v61, %v1754_v56  ;;  %2008 = vmatpush3.bf16.msra.mxu0 %v2007_v47  ;;  %v868_v56 = vld [vmem:[%s2881_s7 + $0x28] sm:$0xff]  ;;  %v869_v61 = vld [vmem:[%s2881_s7 + $0x30] sm:$0xff]  ;;  %v2033_v47 = vpack.c.bf16 %v894_v46, %v893_v45 }
 0x23c   :  { %v435_v60 = vmul.f32 %v2113_v57, %v409_v58  ;;  %2010 = vmatprep.subr.bf16.mxu0 %v2009_v48  ;;  %v885_v57 = vld [vmem:[%s2881_s7 + $0xb0] sm:$0xff]  ;;  %v886_v58 = vld [vmem:[%s2881_s7 + $0xb8] sm:$0xff]  ;;  %v1287_v45 = vld [vmem:[#allocation10 + $0xb0] sm:$0xff] }
 0x23d   :  { %v877_v48 = vld [vmem:[%s2881_s7 + $0x70] sm:$0xff] }
 0x23e   :  { %547 = vmatmul.mubr.f32.gmra.mrb[18].mxu0 %v433_v59  ;;  %v2015_v59 = vpack.c.bf16 %v868_v56, %v867_v55  ;;  %v2035_v50 = vpack.c.bf16 %v878_v49, %v877_v48  ;;  %v1288_v46 = vld [vmem:[#allocation10 + $0xb8] sm:$0xff]  ;;  %v1271_v49 = vld [vmem:[#allocation10 + $0x30] sm:$0xff] }
 0x23f   :  { %551 = vmatprep.mubr.f32.mxu0 %v2424_v2  ;;  %2012 = vmatpush3.bf16.msra.mxu0 %v2011_v53  ;;  %v858_v53 = vmax.f32 %v856_v52, 1.0  ;;  %v2077_v48 = vpack.c.bf16 %v1288_v46, %v1287_v45  ;;  %v1290_v52 = vld [vmem:[#allocation10 + $0xc8] sm:$0xff] }
 0x240   :  { %2014 = vmatprep.subr.bf16.mxu0 %v2013_v54 }
 0x242   :  { %552 = vmatmul.mubr.f32.gmra.mrb[20].mxu0 %v435_v60  ;;  %v2017_v60 = vpack.c.bf16 %v886_v58, %v885_v57 }
 0x243   :  { %556 = vmatprep.mubr.f32.mxu0 %v2427_v4  ;;  %2016 = vmatpush3.bf16.msra.mxu0 %v2015_v59 }
 0x244   :  { %2018 = vmatprep.subr.bf16.mxu0 %v2017_v60  ;;  %v980_v60 = vld [vmem:[%s2884_s10] sm:$0xff] }
 0x246   :  { %557 = vmatmul.mubr.f32.gmra.mrb[22].mxu0 %v437_v62  ;;  %v870_v62 = vld [vmem:[%s2881_s7 + $0x38] sm:$0xff] }
 0x247   :  { %v2019_v63 = vpack.c.bf16 %v870_v62, %v869_v61  ;;  %v1425_v62 = vld [vmem:[%s2882_s8] ss:$0 sm:$0xff]  ;;  %s1381_s8 = sshll.u32 %s2272_s23, 4  ;;  %s1382_s8 = int_to_ptr.vmem [resolvable:$true] %s1381_s8 }
 0x248   :  { %s2232_s24 = scalar_lea.vmem %s1382_s8, 128  ;;  %p2237_p13 = scmp.lt.s32.totalorder %s1382_s8, %s1382_s8 }
 0x249   :  { %2020 = vmatpush3.bf16.msra.mxu0 %v2019_v63  ;;  %p2233_p12 = scmp.ne.s32.totalorder %s1382_s8, %s2232_s24  ;;  %p2238_p0 = scmp.lt.s32.totalorder %s2232_s24, %s2232_s24 }
 0x24b   :  { %p2239_p1 = por %p2238_p0, %p2237_p13 }
 0x24d   :  { %p2240_p2 = pnand %p2239_p1, %p2233_p12 }
 0x30d   :  { %v1519_v1 = vpop.f32.mrb[16].mxu0 }
 0x30e   :  { %v1520_v3 = vpop.f32.mrb[17].mxu0 }
 0x30f   :  { %v1521_v2 = vadd.f32 %v1520_v3, %v1519_v1  ;;  %v887_v1 = vld [vmem:[%s2881_s7 + $0xc0] sm:$0xff] }
 0x310   :  { %v871_v3 = vld [vmem:[%s2881_s7 + $0x40] sm:$0xff] }
 0x311   :  { %v544_v5 = vadd.f32 %v1521_v2, %v1408_v0  ;;  %v1522_v6 = vpop.f32.mrb[18].mxu0 }
 0x312   :  { %v1523_v7 = vpop.f32.mrb[19].mxu0 }
 0x313   :  { %v562_v4 = vmax.f32 %v544_v5, 0.0  ;;  %v1524_v8 = vadd.f32 %v1523_v7, %v1522_v6  ;;  %v872_v5 = vld [vmem:[%s2881_s7 + $0x48] sm:$0xff]  ;;  %v889_v6 = vld [vmem:[%s2881_s7 + $0xd0] sm:$0xff]  ;;  %v890_v7 = vld [vmem:[%s2881_s7 + $0xd8] sm:$0xff] }
 0x315   :  { %v2613_v9 = vadd.f32 %v1524_v8, %v1408_v0  ;;  %v1525_v10 = vpop.f32.mrb[20].mxu0  ;;  %966 = vmatprep.mubr.f32.mxu0 %v562_v4  ;;  %v2025_v8 = vpack.c.bf16 %v890_v7, %v889_v6 }
 0x316   :  { %v1526_v11 = vpop.f32.mrb[21].mxu0 }
 0x317   :  { %v563_v12 = vmax.f32 %v2613_v9, 0.0  ;;  %v1527_v13 = vadd.f32 %v1526_v11, %v1525_v10  ;;  %v873_v10 = vld [vmem:[%s2881_s7 + $0x50] sm:$0xff]  ;;  %v874_v11 = vld [vmem:[%s2881_s7 + $0x58] sm:$0xff] }
 0x319   :  { %v1528_v14 = vpop.f32.mrb[22].mxu0  ;;  %v1965_v15 = vpack.c.bf16 %v563_v12, %v562_v4  ;;  %v554_v17 = vadd.f32 %v1527_v13, %v1408_v0  ;;  %v2023_v4 = vpack.c.bf16 %v872_v5, %v871_v3  ;;  %v891_v13 = vld [vmem:[%s2881_s7 + $0xe0] sm:$0xff] }
 0x31a   :  { %v1529_v16 = vpop.f32.mrb[23].mxu0 }
 0x31b   :  { %v1530_v18 = vadd.f32 %v1529_v16, %v1528_v14  ;;  %1966 = vmatprep.subr.bf16.mxu1 %v1965_v15  ;;  %v564_v20 = vmax.f32 %v554_v17, 0.0  ;;  %v892_v14 = vld [vmem:[%s2881_s7 + $0xe8] sm:$0xff]  ;;  %v875_v17 = vld [vmem:[%s2881_s7 + $0x60] sm:$0xff] }
 0x31c   :  { %1968 = vmatpush3.bf16.msra.mxu1 %v1965_v15  ;;  %v2027_v15 = vpack.c.bf16 %v874_v11, %v873_v10  ;;  %v2029_v16 = vpack.c.bf16 %v892_v14, %v891_v13  ;;  %v983_v10 = vld [vmem:[%s2884_s10 + $0x18] sm:$0xff]  ;;  %v984_v11 = vld [vmem:[%s2884_s10 + $0x20] sm:$0xff]  ;;  %v985_v13 = vld [vmem:[%s2884_s10 + $0x28] sm:$0xff] }
 0x31d   :  { %v559_v19 = vadd.f32 %v1530_v18, %v1408_v0  ;;  %v888_v0 = vld [vmem:[%s2881_s7 + $0xc8] sm:$0xff]  ;;  %v986_v14 = vld [vmem:[%s2884_s10 + $0x30] sm:$0xff] }
 0x31e   :  { %v2021_v2 = vpack.c.bf16 %v888_v0, %v887_v1  ;;  %v876_v18 = vld [vmem:[%s2881_s7 + $0x68] sm:$0xff] }
 0x31f   :  { %v565_v21 = vmax.f32 %v559_v19, 0.0  ;;  %v2031_v19 = vpack.c.bf16 %v876_v18, %v875_v17  ;;  %v989_v17 = vld [vmem:[%s2884_s10 + $0x48] sm:$0xff]  ;;  %v990_v18 = vld [vmem:[%s2884_s10 + $0x50] sm:$0xff] }
 0x320   :  { %2022 = vmatprep.subr.bf16.mxu0 %v2021_v2 }
 0x321   :  { %v1969_v22 = vpack.c.bf16 %v565_v21, %v564_v20  ;;  %2024 = vmatpush3.bf16.msra.mxu0 %v2023_v4  ;;  %v981_v4 = vld [vmem:[%s2884_s10 + $0x8] sm:$0xff] }
 0x322   :  { %2026 = vmatprep.subr.bf16.mxu0 %v2025_v8  ;;  %v982_v8 = vld [vmem:[%s2884_s10 + $0x10] sm:$0xff] }
 0x323   :  { %1970 = vmatprep.subr.bf16.mxu1 %v1969_v22 }
 0x324   :  { %1972 = vmatpush3.bf16.msra.mxu1 %v1969_v22 }
 0x325   :  { %2028 = vmatpush3.bf16.msra.mxu0 %v2027_v15  ;;  %v987_v15 = vld [vmem:[%s2884_s10 + $0x38] sm:$0xff] }
 0x326   :  { %2030 = vmatprep.subr.bf16.mxu0 %v2029_v16  ;;  %v988_v16 = vld [vmem:[%s2884_s10 + $0x40] sm:$0xff] }
 0x327   :  { %1764 = vmatmul.mubr.msk.f32.vlgmr.msra.gmra.mrb[4].mxu1 %vm584_vm1, %v569_v23 }
 0x328   :  { %1766 = vmatprep.mubr.msk.f32.mxu1 %vm584_vm1, %v570_v24 }
 0x329   :  { %2032 = vmatpush3.bf16.msra.mxu0 %v2031_v19  ;;  %v991_v19 = vld [vmem:[%s2884_s10 + $0x58] sm:$0xff] }
 0x32a   :  { %2034 = vmatprep.subr.bf16.mxu0 %v2033_v47 }
 0x32b   :  { %1767 = vmatmul.mubr.msk.f32.gmra.mrb[6].mxu1 %vm584_vm1, %v571_v25 }
 0x32c   :  { %1769 = vmatprep.mubr.msk.f32.mxu1 %vm584_vm1, %v572_v26 }
 0x32d   :  { %2036 = vmatpush3.bf16.msra.mxu0 %v2035_v50  ;;  %v1272_v50 = vld [vmem:[#allocation10 + $0x38] sm:$0xff] }
 0x32f   :  { %1770 = vmatmul.mubr.msk.f32.gmra.mrb[8].mxu1 %vm584_vm1, %v573_v27 }
 0x330   :  { %1772 = vmatprep.mubr.msk.f32.mxu1 %vm584_vm1, %v574_v28 }
 0x333   :  { %1773 = vmatmul.mubr.msk.f32.gmra.mrb[10].mxu1 %vm584_vm1, %v575_v32 }
 0x334   :  { %1775 = vmatprep.mubr.msk.f32.mxu1 %vm584_vm1, %v576_v33 }
 0x337   :  { %1776 = vmatmul.mubr.msk.f32.gmra.mrb[12].mxu1 %vm584_vm1, %v577_v34 }
 0x338   :  { %1778 = vmatprep.mubr.msk.f32.mxu1 %vm584_vm1, %v578_v35 }
 0x33b   :  { %1779 = vmatmul.mubr.msk.f32.gmra.mrb[14].mxu1 %vm584_vm1, %v579_v36 }
 0x33c   :  { %1781 = vmatprep.mubr.msk.f32.mxu1 %vm584_vm1, %v580_v37 }
 0x33f   :  { %1782 = vmatmul.mubr.msk.f32.gmra.mrb[16].mxu1 %vm584_vm1, %v581_v38 }
 0x340   :  { %1784 = vmatprep.mubr.msk.f32.mxu1 %vm584_vm1, %v582_v39 }
 0x343   :  { %1785 = vmatmul.mubr.msk.f32.gmra.mrb[18].mxu1 %vm584_vm1, %v583_v40 }
 0x344   :  { %1819 = vmatprep.mubr.f32.mxu1 %v566_v41 }
 0x3fa   :  { %v1765_v20 = vpop.f32.mrb[4].mxu1 }
 0x3fb   :  { %v699_v21 = vpop.f32.mrb[5].mxu1 }
 0x3fc   :  { %v1973_v22 = vpack.c.bf16 %v1765_v20, %v699_v21  ;;  %v992_v20 = vld [vmem:[%s2884_s10 + $0x60] sm:$0xff]  ;;  %v993_v21 = vld [vmem:[%s2884_s10 + $0x68] sm:$0xff] }
 0x3fe   :  { %v1768_v23 = vpop.f32.mrb[6].mxu1  ;;  %1974 = vmatprep.subr.bf16.mxu1 %v1973_v22 }
 0x3ff   :  { %v709_v24 = vpop.f32.mrb[7].mxu1  ;;  %1976 = vmatpush3.bf16.msra.mxu1 %v1973_v22  ;;  %v994_v22 = vld [vmem:[%s2884_s10 + $0x70] sm:$0xff] }
 0x400   :  { %v1977_v25 = vpack.c.bf16 %v1768_v23, %v709_v24  ;;  %v995_v23 = vld [vmem:[%s2884_s10 + $0x78] sm:$0xff]  ;;  %v2269_v24 = vmov 0.0|0.0  }
 0x402   :  { %v1771_v26 = vpop.f32.mrb[8].mxu1  ;;  %1978 = vmatprep.subr.bf16.mxu1 %v1977_v25 }
 0x403   :  { %v719_v27 = vpop.f32.mrb[9].mxu1  ;;  %1980 = vmatpush3.bf16.msra.mxu1 %v1977_v25  ;;  %v2848_v25 = vld [vmem:[#allocation8] sm:$0xff] }
 0x404   :  { %v1981_v28 = vpack.c.bf16 %v1771_v26, %v719_v27  ;;  %v2271_v26 = vmov 0.0   ;;  %1260 = vadd.xlane.f32.xlu0 %v2848_v25  ;;  %v1281_v27 = vld [vmem:[#allocation10 + $0x80] sm:$0xff] }
 0x406   :  { %v1774_v32 = vpop.f32.mrb[10].mxu1  ;;  %1982 = vmatprep.subr.bf16.mxu1 %v1981_v28 }
 0x407   :  { %v729_v33 = vpop.f32.mrb[11].mxu1  ;;  %1984 = vmatpush3.bf16.msra.mxu1 %v1981_v28  ;;  %v1282_v28 = vld [vmem:[#allocation10 + $0x88] sm:$0xff] }
 0x408   :  { %v1985_v34 = vpack.c.bf16 %v1774_v32, %v729_v33  ;;  %v1265_v32 = vld [vmem:[#allocation10] sm:$0xff]  ;;  %v2065_v33 = vpack.c.bf16 %v1282_v28, %v1281_v27 }
 0x40a   :  { %v1777_v35 = vpop.f32.mrb[12].mxu1  ;;  %1986 = vmatprep.subr.bf16.mxu1 %v1985_v34  ;;  %2066 = vmatprep.subr.bf16.mxu0 %v2065_v33 }
 0x40b   :  { %v739_v36 = vpop.f32.mrb[13].mxu1  ;;  %1988 = vmatpush3.bf16.msra.mxu1 %v1985_v34  ;;  %v1266_v34 = vld [vmem:[#allocation10 + $0x8] sm:$0xff] }
 0x40c   :  { %v1989_v37 = vpack.c.bf16 %v1777_v35, %v739_v36  ;;  %v1283_v35 = vld [vmem:[#allocation10 + $0x90] sm:$0xff]  ;;  %v1284_v36 = vld [vmem:[#allocation10 + $0x98] sm:$0xff] }
 0x40e   :  { %v1780_v38 = vpop.f32.mrb[14].mxu1  ;;  %1990 = vmatprep.subr.bf16.mxu1 %v1989_v37 }
 0x40f   :  { %v749_v39 = vpop.f32.mrb[15].mxu1  ;;  %1992 = vmatpush3.bf16.msra.mxu1 %v1989_v37  ;;  %v2067_v37 = vpack.c.bf16 %v1266_v34, %v1265_v32 }
 0x410   :  { %v1993_v40 = vpack.c.bf16 %v1780_v38, %v749_v39  ;;  %v2069_v38 = vpack.c.bf16 %v1284_v36, %v1283_v35  ;;  %v1267_v39 = vld [vmem:[#allocation10 + $0x10] sm:$0xff] }
 0x412   :  { %v1783_v41 = vpop.f32.mrb[16].mxu1  ;;  %1994 = vmatprep.subr.bf16.mxu1 %v1993_v40 }
 0x413   :  { %v759_v43 = vpop.f32.mrb[17].mxu1  ;;  %1996 = vmatpush3.bf16.msra.mxu1 %v1993_v40  ;;  %v1268_v40 = vld [vmem:[#allocation10 + $0x18] sm:$0xff] }
 0x414   :  { %v1997_v30 = vpack.c.bf16 %v1783_v41, %v759_v43  ;;  %v1285_v41 = vld [vmem:[#allocation10 + $0xa0] sm:$0xff]  ;;  %v1286_v43 = vld [vmem:[#allocation10 + $0xa8] sm:$0xff] }
 0x416   :  { %v1786_v29 = vpop.f32.mrb[18].mxu1  ;;  %1998 = vmatprep.subr.bf16.mxu1 %v1997_v30 }
 0x417   :  { %v769_v31 = vpop.f32.mrb[19].mxu1  ;;  %2000 = vmatpush3.bf16.msra.mxu1 %v1997_v30  ;;  %v2071_v30 = vpack.c.bf16 %v1268_v40, %v1267_v39 }
 0x418   :  { %v2001_v44 = vpack.c.bf16 %v1786_v29, %v769_v31  ;;  %v2073_v29 = vpack.c.bf16 %v1286_v43, %v1285_v41  ;;  %v1269_v31 = vld [vmem:[#allocation10 + $0x20] sm:$0xff] }
 0x41a   :  { %2002 = vmatprep.subr.bf16.mxu1 %v2001_v44 }
 0x41b   :  { %2004 = vmatpush3.bf16.msra.mxu1 %v2001_v44  ;;  %v1270_v44 = vld [vmem:[#allocation10 + $0x28] sm:$0xff] }
 0x41c   :  { %v2075_v47 = vpack.c.bf16 %v1270_v44, %v1269_v31 }
 0x41e   :  { %1820 = vmatmul.mubr.f32.vlgmr.msra.gmra.mrb[20].mxu1 %v2678_v42  ;;  %v854_v42 = vpop.xlane.xlu0 %853 }
 0x41f   :  { %v857_v51 = vmax.f32 %v854_v42, 1.0  ;;  %1826 = vmatprep.mubr.msk.f32.mxu1 %vm996_vm2, %v980_v60  ;;  %v2079_v42 = vpack.c.bf16 %v1272_v50, %v1271_v49  ;;  %v1275_v60 = vld [vmem:[#allocation10 + $0x50] sm:$0xff] }
 0x421   :  { %2116 = vrcp.f32 %v857_v51  ;;  %v1289_v51 = vld [vmem:[#allocation10 + $0xc0] sm:$0xff] }
 0x422   :  { %2118 = vrcp.f32 %v858_v53  ;;  %v1273_v53 = vld [vmem:[#allocation10 + $0x40] sm:$0xff] }
 0x42b   :  { %v2117_v54 = vpop.eup %2116 }
 0x42c   :  { %v2119_v58 = vpop.eup %2118 }
 0x491   :  { %v1261_v40 = vpop.xlane.xlu0 %1260 }
 0x492   :  { %v1262_v41 = vmax.f32 %v1261_v40, 1.0 }
 0x494   :  { %2120 = vrcp.f32 %v1262_v41 }
 0x49e   :  { %v2121_v43 = vpop.eup %2120 }
 0x4f1   :  { %v1821_v55 = vpop.f32.mrb[20].mxu1 }
 0x4f2   :  { %v844_v56 = vpop.f32.mrb[21].mxu1  ;;  %v862_v59 = vmul.f32 %v2119_v58, %v1821_v55  ;;  %v1274_v55 = vld [vmem:[#allocation10 + $0x48] sm:$0xff] }
 0x4f3   :  { %v860_v57 = vmul.f32 %v2117_v54, %v844_v56  ;;  %v2081_v54 = vpack.c.bf16 %v1290_v52, %v1289_v51  ;;  %v1291_v56 = vld [vmem:[#allocation10 + $0xd0] sm:$0xff]  ;;  %v2083_v58 = vpack.c.bf16 %v1274_v55, %v1273_v53 }
 0x4f5   :  { %967 = vmatmul.mubr.f32.vlgmr.msra.gmra.mrb[24].mxu0 %v860_v57  ;;  %v1292_v57 = vld [vmem:[#allocation10 + $0xd8] sm:$0xff] }
 0x4f6   :  { %971 = vmatprep.mubr.f32.mxu0 %v563_v12  ;;  %2068 = vmatpush3.bf16.msra.mxu0 %v2067_v37  ;;  %v1279_v37 = vld [vmem:[#allocation10 + $0x70] sm:$0xff] }
 0x4f7   :  { %2070 = vmatprep.subr.bf16.mxu0 %v2069_v38  ;;  %v1280_v38 = vld [vmem:[#allocation10 + $0x78] sm:$0xff] }
 0x4f8   :  { %v2095_v39 = vpack.c.bf16 %v1280_v38, %v1279_v37 }
 0x4f9   :  { %972 = vmatmul.mubr.f32.gmra.mrb[26].mxu0 %v862_v59  ;;  %v2085_v59 = vpack.c.bf16 %v1292_v57, %v1291_v56 }
 0x4fa   :  { %2072 = vmatpush3.bf16.msra.mxu0 %v2071_v30 }
 0x4fb   :  { %2074 = vmatprep.subr.bf16.mxu0 %v2073_v29 }
 0x4fe   :  { %2076 = vmatpush3.bf16.msra.mxu0 %v2075_v47 }
 0x4ff   :  { %2078 = vmatprep.subr.bf16.mxu0 %v2077_v48 }
 0x502   :  { %2080 = vmatpush3.bf16.msra.mxu0 %v2079_v42 }
 0x503   :  { %2082 = vmatprep.subr.bf16.mxu0 %v2081_v54 }
 0x506   :  { %2084 = vmatpush3.bf16.msra.mxu0 %v2083_v58 }
 0x507   :  { %2086 = vmatprep.subr.bf16.mxu0 %v2085_v59 }
 0x5c8   :  { %v1601_v61 = vpop.f32.mrb[24].mxu0 }
 0x5c9   :  { %v1602_v63 = vpop.f32.mrb[25].mxu0 }
 0x5ca   :  { %v1603_v1 = vadd.f32 %v1602_v63, %v1601_v61  ;;  %v1276_v61 = vld [vmem:[#allocation10 + $0x58] sm:$0xff]  ;;  %v1294_v63 = vld [vmem:[#allocation10 + $0xe8] sm:$0xff] }
 0x5cc   :  { %v969_v0 = vadd.f32 %v1603_v1, %v1425_v62  ;;  %v1604_v3 = vpop.f32.mrb[26].mxu0  ;;  %v2087_v1 = vpack.c.bf16 %v1276_v61, %v1275_v60 }
 0x5cd   :  { %v1605_v9 = vpop.f32.mrb[27].mxu0 }
 0x5ce   :  { %v977_v12 = vmax.f32 %v969_v0, 0.0  ;;  %v1606_v2 = vadd.f32 %v1605_v9, %v1604_v3  ;;  %v1277_v3 = vld [vmem:[#allocation10 + $0x60] sm:$0xff]  ;;  %v1278_v9 = vld [vmem:[#allocation10 + $0x68] sm:$0xff]  ;;  %2088 = vmatpush3.bf16.msra.mxu0 %v2087_v1 }
 0x5d0   :  { %v974_v5 = vadd.f32 %v1606_v2, %v1425_v62  ;;  %1368 = vmatprep.mubr.f32.mxu0 %v977_v12  ;;  %v1293_v62 = vld [vmem:[#allocation10 + $0xe0] sm:$0xff]  ;;  %v1296_v2 = vld [vmem:[#allocation10 + $0xf8] sm:$0xff] }
 0x5d1   :  { %v2089_v0 = vpack.c.bf16 %v1294_v63, %v1293_v62 }
 0x5d2   :  { %v978_v6 = vmax.f32 %v974_v5, 0.0  ;;  %v2091_v5 = vpack.c.bf16 %v1278_v9, %v1277_v3 }
 0x5d3   :  { %2090 = vmatprep.subr.bf16.mxu0 %v2089_v0 }
 0x5d4   :  { %v2037_v7 = vpack.c.bf16 %v978_v6, %v977_v12  ;;  %v1295_v12 = vld [vmem:[#allocation10 + $0xf0] sm:$0xff]  ;;  %2092 = vmatpush3.bf16.msra.mxu0 %v2091_v5 }
 0x5d5   :  { %v2093_v6 = vpack.c.bf16 %v1296_v2, %v1295_v12 }
 0x5d6   :  { %2038 = vmatprep.subr.bf16.mxu1 %v2037_v7 }
 0x5d7   :  { %2040 = vmatpush3.bf16.msra.mxu1 %v2037_v7  ;;  %2094 = vmatprep.subr.bf16.mxu0 %v2093_v6 }
 0x5d8   :  { %2041 = vmatprep.subr.bf16.mxu1 %v2269_v24  ;;  %2096 = vmatpush3.bf16.msra.mxu0 %v2095_v39 }
 0x5da   :  { %1827 = vmatmul.mubr.msk.f32.vlgmr.msra.gmra.mrb[22].mxu1 %vm996_vm2, %v981_v4 }
 0x5db   :  { %1829 = vmatprep.mubr.msk.f32.mxu1 %vm996_vm2, %v982_v8 }
 0x5de   :  { %1830 = vmatmul.mubr.msk.f32.gmra.mrb[24].mxu1 %vm996_vm2, %v983_v10 }
 0x5df   :  { %1832 = vmatprep.mubr.msk.f32.mxu1 %vm996_vm2, %v984_v11 }
 0x5e2   :  { %1833 = vmatmul.mubr.msk.f32.gmra.mrb[26].mxu1 %vm996_vm2, %v985_v13 }
 0x5e3   :  { %1835 = vmatprep.mubr.msk.f32.mxu1 %vm996_vm2, %v986_v14 }
 0x5e6   :  { %1836 = vmatmul.mubr.msk.f32.gmra.mrb[28].mxu1 %vm996_vm2, %v987_v15 }
 0x5e7   :  { %1838 = vmatprep.mubr.msk.f32.mxu1 %vm996_vm2, %v988_v16 }
 0x5ea   :  { %1839 = vmatmul.mubr.msk.f32.gmra.mrb[30].mxu1 %vm996_vm2, %v989_v17 }
 0x5eb   :  { %1841 = vmatprep.mubr.msk.f32.mxu1 %vm996_vm2, %v990_v18 }
 0x5ee   :  { %1842 = vmatmul.mubr.msk.f32.gmra.mrb[32].mxu1 %vm996_vm2, %v991_v19 }
 0x5ef   :  { %1844 = vmatprep.mubr.msk.f32.mxu1 %vm996_vm2, %v992_v20 }
 0x5f2   :  { %1845 = vmatmul.mubr.msk.f32.gmra.mrb[34].mxu1 %vm996_vm2, %v993_v21 }
 0x5f3   :  { %1847 = vmatprep.mubr.msk.f32.mxu1 %vm996_vm2, %v994_v22 }
 0x5f6   :  { %1848 = vmatmul.mubr.msk.f32.gmra.mrb[36].mxu1 %vm996_vm2, %v995_v23 }
 0x5f7   :  { %1882 = vmatprep.mubr.msk.f32.mxu1 %vm2270_vm3, %v2271_v26 }
 0x6ad   :  { %v1828_v7 = vpop.f32.mrb[22].mxu1 }
 0x6ae   :  { %v1111_v4 = vpop.f32.mrb[23].mxu1 }
 0x6af   :  { %v2042_v8 = vpack.c.bf16 %v1828_v7, %v1111_v4 }
 0x6b1   :  { %v1831_v10 = vpop.f32.mrb[24].mxu1  ;;  %2043 = vmatpush3.bf16.msra.mxu1 %v2042_v8 }
 0x6b2   :  { %v1121_v11 = vpop.f32.mrb[25].mxu1  ;;  %2044 = vmatprep.subr.bf16.mxu1 %v2269_v24 }
 0x6b3   :  { %v2045_v13 = vpack.c.bf16 %v1831_v10, %v1121_v11 }
 0x6b5   :  { %v1834_v14 = vpop.f32.mrb[26].mxu1  ;;  %2046 = vmatpush3.bf16.msra.mxu1 %v2045_v13 }
 0x6b6   :  { %v1131_v15 = vpop.f32.mrb[27].mxu1  ;;  %2047 = vmatprep.subr.bf16.mxu1 %v2269_v24 }
 0x6b7   :  { %v2048_v16 = vpack.c.bf16 %v1834_v14, %v1131_v15 }
 0x6b9   :  { %v1837_v17 = vpop.f32.mrb[28].mxu1  ;;  %2049 = vmatpush3.bf16.msra.mxu1 %v2048_v16 }
 0x6ba   :  { %v1141_v18 = vpop.f32.mrb[29].mxu1  ;;  %2050 = vmatprep.subr.bf16.mxu1 %v2269_v24 }
 0x6bb   :  { %v2051_v19 = vpack.c.bf16 %v1837_v17, %v1141_v18 }
 0x6bd   :  { %v1840_v20 = vpop.f32.mrb[30].mxu1  ;;  %2052 = vmatpush3.bf16.msra.mxu1 %v2051_v19 }
 0x6be   :  { %v1151_v21 = vpop.f32.mrb[31].mxu1  ;;  %2053 = vmatprep.subr.bf16.mxu1 %v2269_v24 }
 0x6bf   :  { %v2054_v22 = vpack.c.bf16 %v1840_v20, %v1151_v21 }
 0x6c1   :  { %v1843_v23 = vpop.f32.mrb[32].mxu1  ;;  %2055 = vmatpush3.bf16.msra.mxu1 %v2054_v22 }
 0x6c2   :  { %v1161_v26 = vpop.f32.mrb[33].mxu1  ;;  %2056 = vmatprep.subr.bf16.mxu1 %v2269_v24 }
 0x6c3   :  { %v2057_v27 = vpack.c.bf16 %v1843_v23, %v1161_v26 }
 0x6c5   :  { %v1846_v28 = vpop.f32.mrb[34].mxu1  ;;  %2058 = vmatpush3.bf16.msra.mxu1 %v2057_v27 }
 0x6c6   :  { %v1171_v32 = vpop.f32.mrb[35].mxu1  ;;  %2059 = vmatprep.subr.bf16.mxu1 %v2269_v24 }
 0x6c7   :  { %v2060_v33 = vpack.c.bf16 %v1846_v28, %v1171_v32 }
 0x6c9   :  { %v1849_v34 = vpop.f32.mrb[36].mxu1  ;;  %2061 = vmatpush3.bf16.msra.mxu1 %v2060_v33 }
 0x6ca   :  { %v1181_v35 = vpop.f32.mrb[37].mxu1  ;;  %2062 = vmatprep.subr.bf16.mxu1 %v2269_v24  ;;  %v1442_v24 = vld [vmem:[%s2886_s12] ss:$0 sm:$0xff] }
 0x6cb   :  { %v2063_v36 = vpack.c.bf16 %v1849_v34, %v1181_v35 }
 0x6cd   :  { %2064 = vmatpush3.bf16.msra.mxu1 %v2063_v36 }
 0x6d0   :  { %1883 = vmatmul.mubr.f32.vlgmr.msra.gmra.mrb[38].mxu1 %v2848_v25 }
 0x7a3   :  { %v1256_v30 = vpop.f32.mrb[38].mxu1 }
 0x7a4   :  { %v1264_v29 = vmul.f32 %v2121_v43, %v1256_v30  ;;  %v1884_v31 = vpop.f32.mrb[39].mxu1 }
 0x7a6   :  { %1369 = vmatmul.mubr.f32.vlgmr.msra.gmra.mrb[28].mxu0 %v1264_v29 }
 0x879   :  { %v1674_v44 = vpop.f32.mrb[28].mxu0 }
 0x87a   :  { %v1675_v45 = vpop.f32.mrb[29].mxu0 }
 0x87b   :  { %v1676_v25 = vadd.f32 %v1675_v45, %v1674_v44 }
 0x87d   :  { %v1371_v46 = vadd.f32 %v1676_v25, %v1442_v24 }
 0x87f   :  { %1374 = vst [vmem:[#allocation11] sm:$0xff] %v1371_v46 }
 0x880   :  { %2243 = shalt.err (!%p2240_p2)
}
 0x881   :  { %s2244_s0 = scalar_lea.hbm %s2887_s13, 128 }
 0x882   :  { %p2245_p3 = scmp.ne.s32.totalorder %s2887_s13, %s2244_s0  ;;  %p2248_p4 = scmp.lt.u32.totalorder %s2244_s0, %s2887_s13 }
 0x884   :  { %p2250_p5 = pnand %p2248_p4, %p2245_p3 }
 0x886   :  { %2253 = shalt.err (!%p2250_p5)
}
 0x887   :  { %1384 = dma.vmem_to_hbm [thread:$0]  %s1382_s8, 128, %s2887_s13, [#allocation4]  }
 0x888   :  { %2260 = dma.done.wait [#allocation4], 128  }
 0x889   :  { %2261 = vsyncadd [#allocation4], 4294967168 }
 0x88a   :  { %1388 = vsyncpa [#allocation3], 1 }
 0x88b   :  { %1389 = vsyncpa [#allocation6], 1 }
 0x88c   :  { %1390 = vsyncpa [#allocation9], 1 }
 0x88d   :  { %1391 = vsyncpa [#allocation4], 1 }

</bundles_post_ra>
